<compile_context>
chip_gen: v7x
topology: tpu7x:2x2x1
jax: 0.10.0
libtpu: 0.0.40
codegen_flags: <defaults>
</compile_context>

<pallas_src>
import jax
import jax.numpy as jnp
from jax import lax
from jax.experimental import pallas as pl
from jax.experimental.pallas import tpu as pltpu

IN_DIM = 8
HIDDEN = 128
NACT = 4
HEAD = 128          # padded fused-head width (4 logits + 1 value + zero padding)
DEFAULT_TB = 512    # batch tile (rows per grid step), multiple of 8


def actor_critic_kernel(x_ref, w1_ref, b1_ref, wh_ref, bh_ref, out_ref):
    # x: (TB, 8) f32; w1: (8, 128) bf16; b1: (1, 128) f32;
    # wh: (128, 128) bf16; bh: (1, 128) f32; out: (TB, 128) f32
    x = x_ref[...].astype(jnp.bfloat16)

    # affine + ReLU (MXU matmul, bf16 operands, f32 accumulation)
    h = jnp.dot(x, w1_ref[...], preferred_element_type=jnp.float32) + b1_ref[...]
    h = jnp.maximum(h, 0.0)                                            # (TB, 128) f32

    # fused action/value head: cols 0..3 = action logits, col 4 = value, rest 0
    head = jnp.dot(h.astype(jnp.bfloat16), wh_ref[...],
                   preferred_element_type=jnp.float32) + bh_ref[...]   # (TB, 128) f32

    # masked log-softmax over the first NACT lanes (all math in f32)
    col = lax.broadcasted_iota(jnp.int32, head.shape, 1)
    act_mask = col < NACT
    masked = jnp.where(act_mask, head, -jnp.inf)
    m = jnp.max(masked, axis=-1, keepdims=True)                        # (TB, 1)
    p = jnp.exp(masked - m)                                            # 0 on padding lanes
    s = jnp.sum(p, axis=-1, keepdims=True)                             # (TB, 1)
    log_s = jnp.log(s)

    # Single lane-dense output slab:
    #   lanes 0..3 : log-softmax(action logits)
    #   lane  4    : state value (head lane 4; wh/bh padding is zero so lanes
    #                5..127 of `head` are exactly 0 and stay 0 in the output)
    out_ref[...] = jnp.where(act_mask, head - m - log_s, head)


def _round_up(n, m):
    return ((n + m - 1) // m) * m


def init_params(key):
    """Deterministic init mimicking torch.nn.Linear's U(-1/sqrt(fan_in), 1/sqrt(fan_in))."""
    k1, k2, k3, k4, k5, k6 = jax.random.split(key, 6)

    def u(k, shape, fan_in):
        bound = 1.0 / jnp.sqrt(float(fan_in))
        return jax.random.uniform(k, shape, jnp.float32, -bound, bound)

    # affine: Linear(8, 128)   -> stored transposed (8, 128)
    w1 = u(k1, (IN_DIM, HIDDEN), IN_DIM)
    b1 = u(k2, (1, HIDDEN), IN_DIM)

    # action_layer: Linear(128, 4);  value_layer: Linear(128, 1)
    wa = u(k3, (HIDDEN, NACT), HIDDEN)
    ba = u(k4, (1, NACT), HIDDEN)
    wv = u(k5, (HIDDEN, 1), HIDDEN)
    bv = u(k6, (1, 1), HIDDEN)

    # fuse heads into one lane-dense (128, 128) weight: [action | value | zeros]
    wh = jnp.zeros((HIDDEN, HEAD), jnp.float32)
    wh = wh.at[:, :NACT].set(wa).at[:, NACT:NACT + 1].set(wv)
    bh = jnp.zeros((1, HEAD), jnp.float32)
    bh = bh.at[:, :NACT].set(ba).at[:, NACT:NACT + 1].set(bv)

    # MXU operands in bf16; biases stay f32 (added after the f32-accum matmul)
    return {"w1": w1.astype(jnp.bfloat16), "b1": b1,
            "wh": wh.astype(jnp.bfloat16), "bh": bh}


def actor_critic_forward(params, x, sample_key, tb=DEFAULT_TB):
    """Returns (action, action_logprob, state_value, action_probs) for a batch of states."""
    B = x.shape[0]

    # Batch tile: multiple of 8 sublanes, capped so the double-buffered
    # (TB, 128) f32 output + (TB, 8) input stay tiny vs. 32 MiB scoped VMEM.
    tb = min(tb, _round_up(B, 8))
    padded_b = _round_up(B, tb)
    if padded_b != B:
        x = jnp.pad(x, ((0, padded_b - B), (0, 0)))

    out = pl.pallas_call(
        actor_critic_kernel,
        out_shape=jax.ShapeDtypeStruct((padded_b, HEAD), jnp.float32),
        grid=(padded_b // tb,),
        in_specs=[
            pl.BlockSpec((tb, IN_DIM), lambda i: (i, 0)),
            pl.BlockSpec((IN_DIM, HIDDEN), lambda i: (0, 0)),
            pl.BlockSpec((1, HIDDEN), lambda i: (0, 0)),
            pl.BlockSpec((HIDDEN, HEAD), lambda i: (0, 0)),
            pl.BlockSpec((1, HEAD), lambda i: (0, 0)),
        ],
        out_specs=pl.BlockSpec((tb, HEAD), lambda i: (i, 0)),
        compiler_params=pltpu.CompilerParams(
            dimension_semantics=("parallel",)),
    )(x, params["w1"], params["b1"], params["wh"], params["bh"])

    out = out[:B]
    logp = out[:, :NACT]          # (B, 4) log-softmax of action logits
    value = out[:, NACT]          # (B,)   state value (packed in lane 4)
    probs = jnp.exp(logp)         # (B, 4) derived in XLA glue (fuses w/ surroundings)

    # Categorical(probs).sample() + log_prob(action)  — glue, not hot path.
    action = jax.random.categorical(sample_key, logp, axis=-1)           # (B,)
    action_logprob = jnp.take_along_axis(logp, action[:, None], axis=-1)[:, 0]
    return action, action_logprob, value, probs


if __name__ == "__main__":
    key = jax.random.PRNGKey(0)
    pkey, xkey, skey = jax.random.split(key, 3)

    params = init_params(pkey)
    B = 8  # small demo batch; multiple of 8 so every f32 vreg sublane is used
    state = jax.random.normal(xkey, (B, IN_DIM), jnp.float32)   # LunarLander obs batch

    action, logprob, value, probs = actor_critic_forward(params, state, skey)
    jax.block_until_ready((action, logprob, value, probs))

    # sanity: probabilities sum to 1 (exp of an exactly-normalized log-softmax)
    assert jnp.allclose(jnp.sum(probs, axis=-1), 1.0, atol=1e-4)
    assert action.shape == (B,) and value.shape == (B,) and probs.shape == (B, NACT)
    # TODO(synk): calculateLoss / reward buffers are training-loop host logic, not a kernel.
    print("KERNEL_OK")
</pallas_src>

<mosaic_0001>
module attributes {stable_mosaic.version = 11 : i64} {
  func.func @actor_critic_kernel(%arg0: i32, %arg1: memref<8x8xf32, #tpu.memory_space<vmem>>, %arg2: memref<8x128xbf16, #tpu.memory_space<vmem>>, %arg3: memref<1x128xf32, #tpu.memory_space<vmem>>, %arg4: memref<128x128xbf16, #tpu.memory_space<vmem>>, %arg5: memref<1x128xf32, #tpu.memory_space<vmem>>, %arg6: memref<8x128xf32, #tpu.memory_space<vmem>>) attributes {dimension_semantics = [#tpu.dimension_semantics<parallel>], iteration_bounds = array<i64: 1>, scalar_prefetch = 0 : i64, scratch_operands = 0 : i64, tpu.core_type = #tpu.core_type<tc>, window_params = [{transform_indices = @transform_0, window_bounds = array<i64: 8, 8>}, {pipeline_mode = #tpu.pipeline_mode<synchronous>, transform_indices = @transform_1, window_bounds = array<i64: 8, 128>}, {pipeline_mode = #tpu.pipeline_mode<synchronous>, transform_indices = @transform_2, window_bounds = array<i64: 1, 128>}, {pipeline_mode = #tpu.pipeline_mode<synchronous>, transform_indices = @transform_3, window_bounds = array<i64: 128, 128>}, {pipeline_mode = #tpu.pipeline_mode<synchronous>, transform_indices = @transform_4, window_bounds = array<i64: 1, 128>}, {transform_indices = @transform_5, window_bounds = array<i64: 8, 128>}]} {
    %c0 = arith.constant 0 : index
    %c0_0 = arith.constant 0 : index
    %0 = vector.load %arg1[%c0, %c0_0] : memref<8x8xf32, #tpu.memory_space<vmem>>, vector<8x8xf32>
    %1 = arith.truncf %0 : vector<8x8xf32> to vector<8x8xbf16>
    %c0_1 = arith.constant 0 : index
    %c0_2 = arith.constant 0 : index
    %2 = vector.load %arg2[%c0_1, %c0_2] : memref<8x128xbf16, #tpu.memory_space<vmem>>, vector<8x128xbf16>
    %cst = arith.constant dense<0.000000e+00> : vector<8x128xf32>
    %3 = tpu.matmul %1, %2, %cst {dimension_numbers = #tpu.dot_dimension_numbers<[1], [0], [0], [1], [0, 0, 1, 1], [], []>} : vector<8x8xbf16>, vector<8x128xbf16>, vector<8x128xf32> -> vector<8x128xf32>
    %c0_3 = arith.constant 0 : index
    %c0_4 = arith.constant 0 : index
    %4 = vector.load %arg3[%c0_3, %c0_4] : memref<1x128xf32, #tpu.memory_space<vmem>>, vector<1x128xf32>
    %5 = vector.broadcast %4 : vector<1x128xf32> to vector<8x128xf32>
    %6 = arith.addf %3, %5 : vector<8x128xf32>
    %cst_5 = arith.constant 0.000000e+00 : f32
    %7 = vector.broadcast %cst_5 : f32 to vector<8x128xf32>
    %8 = arith.maximumf %6, %7 : vector<8x128xf32>
    %9 = arith.truncf %8 : vector<8x128xf32> to vector<8x128xbf16>
    %c0_6 = arith.constant 0 : index
    %c0_7 = arith.constant 0 : index
    %10 = vector.load %arg4[%c0_6, %c0_7] : memref<128x128xbf16, #tpu.memory_space<vmem>>, vector<128x128xbf16>
    %cst_8 = arith.constant dense<0.000000e+00> : vector<8x128xf32>
    %11 = tpu.matmul %9, %10, %cst_8 {dimension_numbers = #tpu.dot_dimension_numbers<[1], [0], [0], [1], [0, 0, 1, 1], [], []>} : vector<8x128xbf16>, vector<128x128xbf16>, vector<8x128xf32> -> vector<8x128xf32>
    %c0_9 = arith.constant 0 : index
    %c0_10 = arith.constant 0 : index
    %12 = vector.load %arg5[%c0_9, %c0_10] : memref<1x128xf32, #tpu.memory_space<vmem>>, vector<1x128xf32>
    %13 = vector.broadcast %12 : vector<1x128xf32> to vector<8x128xf32>
    %14 = arith.addf %11, %13 : vector<8x128xf32>
    %15 = tpu.iota {dimensions = array<i32: 1>} : vector<8x128xi32>
    %c4_i32 = arith.constant 4 : i32
    %16 = vector.broadcast %c4_i32 : i32 to vector<8x128xi32>
    %17 = arith.cmpi slt, %15, %16 : vector<8x128xi32>
    %cst_11 = arith.constant 0xFF800000 : f32
    %18 = vector.broadcast %cst_11 : f32 to vector<8x128xf32>
    %19 = arith.select %17, %14, %18 : vector<8x128xi1>, vector<8x128xf32>
    %cst_12 = arith.constant dense<0xFF800000> : vector<8xf32>
    %20 = vector.multi_reduction <maximumf>, %19, %cst_12 [1] : vector<8x128xf32> to vector<8xf32>
    %21 = vector.shape_cast %20 : vector<8xf32> to vector<8x1xf32>
    %22 = vector.broadcast %21 : vector<8x1xf32> to vector<8x128xf32>
    %23 = arith.subf %19, %22 : vector<8x128xf32>
    %24 = math.exp %23 : vector<8x128xf32>
    %cst_13 = arith.constant dense<0.000000e+00> : vector<8xf32>
    %25 = vector.multi_reduction <add>, %24, %cst_13 [1] : vector<8x128xf32> to vector<8xf32>
    %26 = vector.shape_cast %25 : vector<8xf32> to vector<8x1xf32>
    %27 = math.log %26 : vector<8x1xf32>
    %28 = vector.broadcast %21 : vector<8x1xf32> to vector<8x128xf32>
    %29 = arith.subf %14, %28 : vector<8x128xf32>
    %30 = vector.broadcast %27 : vector<8x1xf32> to vector<8x128xf32>
    %31 = arith.subf %29, %30 : vector<8x128xf32>
    %32 = arith.select %17, %31, %14 : vector<8x128xi1>, vector<8x128xf32>
    %c0_14 = arith.constant 0 : index
    %c0_15 = arith.constant 0 : index
    %33 = vector.load %arg6[%c0_14, %c0_15] : memref<8x128xf32, #tpu.memory_space<vmem>>, vector<8x128xf32>
    tpu.vector_store %arg6[%c0_14, %c0_15], %32 {strides = array<i32>} : memref<8x128xf32, #tpu.memory_space<vmem>>, vector<8x128xf32>,
    return
  }
  func.func @transform_0(%arg0: i32) -> (i32, i32) {
    %c0_i32 = arith.constant 0 : i32
    %c0_i32_0 = arith.constant 0 : i32
    return %arg0, %c0_i32 : i32, i32
  }
  func.func @transform_1(%arg0: i32) -> (i32, i32) {
    %c0_i32 = arith.constant 0 : i32
    %c0_i32_0 = arith.constant 0 : i32
    %c0_i32_1 = arith.constant 0 : i32
    return %c0_i32, %c0_i32_0 : i32, i32
  }
  func.func @transform_2(%arg0: i32) -> (i32, i32) {
    %c0_i32 = arith.constant 0 : i32
    %c0_i32_0 = arith.constant 0 : i32
    %c0_i32_1 = arith.constant 0 : i32
    return %c0_i32, %c0_i32_0 : i32, i32
  }
  func.func @transform_3(%arg0: i32) -> (i32, i32) {
    %c0_i32 = arith.constant 0 : i32
    %c0_i32_0 = arith.constant 0 : i32
    %c0_i32_1 = arith.constant 0 : i32
    return %c0_i32, %c0_i32_0 : i32, i32
  }
  func.func @transform_4(%arg0: i32) -> (i32, i32) {
    %c0_i32 = arith.constant 0 : i32
    %c0_i32_0 = arith.constant 0 : i32
    %c0_i32_1 = arith.constant 0 : i32
    return %c0_i32, %c0_i32_0 : i32, i32
  }
  func.func @transform_5(%arg0: i32) -> (i32, i32) {
    %c0_i32 = arith.constant 0 : i32
    %c0_i32_0 = arith.constant 0 : i32
    return %arg0, %c0_i32 : i32, i32
  }
}

</mosaic_0001>

<bundles_post_ra>
// kernel: tpu_custom_call.1
= control target key start
LH: loop header
LB: loop body
LE: loop exit
PB: predicated region body
PF: predicated region fallthrough
CT: control target
= control target key end

     0   :  { %10 = vsyncpa [#allocation3], 0  ;;  %s519_s0 = inlined_call_operand.hbm [shape: f32[8,8], index: 0, kind: input, shape index: {}]   ;;  %s520_s1 = inlined_call_operand.hbm [shape: bf16[8,128], index: 1, kind: input, shape index: {}]   ;;  %s521_s2 = inlined_call_operand.vmem [shape: f32[1,128], index: 2, kind: input, shape index: {}]   ;;  %s522_s3 = inlined_call_operand.hbm [shape: bf16[128,128], index: 3, kind: input, shape index: {}]   ;;  %s523_s4 = inlined_call_operand.vmem [shape: f32[1,128], index: 4, kind: input, shape index: {}]   ;;  %s524_s5 = inlined_call_operand.hbm [shape: f32[8,128], index: 5, kind: output, shape index: {}]  }
   0x1   :  { %11 = vsyncpa [#allocation6], 0 }
   0x2   :  { %12 = vsyncpa [#allocation4], 0  ;;  %s425_s18 = smov [#allocation5]   ;;  %s426_s20 = smov [#allocation2]  }
   0x3   :  { %s29_s19 = sshll.u32 %s425_s18, 4  ;;  %s19_s21 = sshll.u32 %s426_s20, 4  ;;  %s30_s19 = int_to_ptr.vmem [resolvable:$true] %s29_s19  ;;  %s20_s21 = int_to_ptr.vmem [resolvable:$true] %s19_s21 }
   0x4   :  { %s331_s24 = scalar_lea.hbm %s520_s1, 64 }
   0x5   :  { %p332_p0 = scmp.ne.s32.totalorder %s520_s1, %s331_s24  ;;  %p335_p1 = scmp.lt.u32.totalorder %s331_s24, %s520_s1 }
   0x7   :  { %p337_p2 = pnand %p335_p1, %p332_p0 }
   0x9   :  { %340 = shalt.err (!%p337_p2)
}
   0xa   :  { %s341_s29 = scalar_lea.vmem %s30_s19, 64  ;;  %p346_p4 = scmp.lt.s32.totalorder %s30_s19, %s30_s19 }
   0xb   :  { %p342_p3 = scmp.ne.s32.totalorder %s30_s19, %s341_s29  ;;  %p347_p5 = scmp.lt.s32.totalorder %s341_s29, %s341_s29 }
   0xd   :  { %p348_p6 = por %p347_p5, %p346_p4 }
   0xf   :  { %p349_p7 = pnand %p348_p6, %p342_p3 }
  0x11   :  { %352 = shalt.err (!%p349_p7)
}
  0x12   :  { %32 = dma.hbm_to_vmem [thread:$0]  %s520_s1, 64, %s30_s19, [#allocation6]  }
  0x13   :  { %s353_s9 = scalar_lea.hbm %s519_s0, 128 }
  0x14   :  { %p354_p8 = scmp.ne.s32.totalorder %s519_s0, %s353_s9  ;;  %p357_p9 = scmp.lt.u32.totalorder %s353_s9, %s519_s0 }
  0x16   :  { %p359_p10 = pnand %p357_p9, %p354_p8 }
  0x18   :  { %362 = shalt.err (!%p359_p10)
}
  0x19   :  { %s363_s14 = scalar_lea.vmem %s20_s21, 128  ;;  %p368_p12 = scmp.lt.s32.totalorder %s20_s21, %s20_s21 }
  0x1a   :  { %p364_p11 = scmp.ne.s32.totalorder %s20_s21, %s363_s14  ;;  %p369_p13 = scmp.lt.s32.totalorder %s363_s14, %s363_s14 }
  0x1c   :  { %p370_p0 = por %p369_p13, %p368_p12 }
  0x1e   :  { %p371_p1 = pnand %p370_p0, %p364_p11 }
  0x20   :  { %374 = shalt.err (!%p371_p1)
}
  0x21   :  { %22 = dma.hbm_to_vmem [thread:$0]  %s519_s0, 128, %s20_s21, [#allocation3]  }
  0x22   :  { %s427_s16 = smov [#allocation7]   ;;  %s375_s20 = scalar_lea.hbm %s522_s3, 1024 }
  0x23   :  { %s40_s17 = sshll.u32 %s427_s16, 4  ;;  %p376_p2 = scmp.ne.s32.totalorder %s522_s3, %s375_s20  ;;  %s41_s17 = int_to_ptr.vmem [resolvable:$true] %s40_s17 }
  0x24   :  { %p379_p3 = scmp.lt.u32.totalorder %s375_s20, %s522_s3 }
  0x26   :  { %p381_p4 = pnand %p379_p3, %p376_p2 }
  0x28   :  { %384 = shalt.err (!%p381_p4)
}
  0x29   :  { %s385_s26 = scalar_lea.vmem %s41_s17, 1024  ;;  %p390_p6 = scmp.lt.s32.totalorder %s41_s17, %s41_s17 }
  0x2a   :  { %p386_p5 = scmp.ne.s32.totalorder %s41_s17, %s385_s26  ;;  %p391_p7 = scmp.lt.s32.totalorder %s385_s26, %s385_s26 }
  0x2c   :  { %p392_p8 = por %p391_p7, %p390_p6 }
  0x2e   :  { %p393_p9 = pnand %p392_p8, %p386_p5 }
  0x30   :  { %396 = shalt.err (!%p393_p9)
}
  0x31   :  { %s428_s0 = smov 64   ;;  %s429_s21 = smov 4  }
  0x32   :  { %46 = dma.hbm_to_vmem [thread:$0]  %s522_s3, 1024, %s41_s17, [#allocation6], %s428_s0, %s428_s0, %s429_s21  }
  0x33   :  { %419 = dma.done.wait [#allocation3], 128  }
  0x34   :  { %420 = vsyncadd [#allocation3], 4294967168 }
  0x35   :  { %421 = dma.done.wait [#allocation6], 1088  }
  0x36   :  { %422 = vsyncadd [#allocation6], 4294966208  ;;  %v430_v0 = vmov 0.0   ;;  %vm431_vm0 = vmmov 0   ;;  %vm73_vm1 = vcmask 1043456   ;;  %v59_v2 = vld [vmem:[#allocation2] sm:$0xff]  ;;  %v230_v21 = vlaneseq }
  0x37   :  { %285 = vmatprep.subr.bf16.mxu0 %v430_v0  ;;  %287 = vmatprep.mubr.msk.bf16.mxu0 %vm431_vm0, %v430_v0  ;;  %v61_v1 = vld [vmem:[#allocation5] sm:$0xf]  ;;  %v60_v4 = vpack.c.bf16 %v59_v2, %v59_v2  ;;  %v319_v5 = vld [vmem:[#allocation7] sm:$0xff]   ;;  %vm69_vm2 = vcmask 64512   ;;  %v320_v6 = vld [vmem:[#allocation7 + $0x8] sm:$0xff]  }
  0x38   :  { %291 = vmatprep.subr.bf16.mxu1 %v430_v0  ;;  %307 = vmatprep.mubr.msk.bf16.mxu1 %vm431_vm0, %v430_v0  ;;  %v75_v3 = vsel %vm73_vm1, %v61_v1, 0  ;;  %v321_v7 = vld [vmem:[#allocation7 + $0x10] sm:$0xff]   ;;  %v322_v8 = vld [vmem:[#allocation7 + $0x18] sm:$0xff]   ;;  %v323_v9 = vld [vmem:[#allocation7 + $0x20] sm:$0xff]   ;;  %v231_v22 = vand.u32 127, %v230_v21 }
  0x39   :  { %286 = vmatpush3.bf16.msra.mxu0 %v75_v3  ;;  %292 = vmatpush3.bf16.msra.mxu1 %v319_v5  ;;  %v324_v10 = vld [vmem:[#allocation7 + $0x28] sm:$0xff]   ;;  %v325_v11 = vld [vmem:[#allocation7 + $0x30] sm:$0xff]   ;;  %v326_v12 = vld [vmem:[#allocation7 + $0x38] sm:$0xff]  }
  0x3a   :  { %293 = vmatprep.subr.bf16.mxu1 %v430_v0  ;;  %v263_v13 = vld [vmem:[%s521_s2] ss:$0 sm:$0xff]  ;;  %vm232_vm3 = vcmp.lt.s32.totalorder %v231_v22, 4  ;;  %s432_s2 = smov [#allocation8]  }
  0x3b   :  { %v265_v23 = vld [vmem:[%s523_s4] ss:$0 sm:$0xff]  ;;  %s253_s4 = sshll.u32 %s432_s2, 4  ;;  %s254_s4 = int_to_ptr.vmem [resolvable:$true] %s253_s4 }
  0x3c   :  { %288 = vmatmul.mubr.msk.bf16.vlgmr.msra.gmra.mrb[0].mxu0 %vm69_vm2, %v60_v4  ;;  %s397_s7 = scalar_lea.vmem %s254_s4, 128  ;;  %p402_p11 = scmp.lt.s32.totalorder %s254_s4, %s254_s4 }
  0x3d   :  { %294 = vmatpush3.bf16.msra.mxu1 %v320_v6  ;;  %p398_p10 = scmp.ne.s32.totalorder %s254_s4, %s397_s7  ;;  %p403_p12 = scmp.lt.s32.totalorder %s397_s7, %s397_s7 }
  0x3e   :  { %295 = vmatprep.subr.bf16.mxu1 %v430_v0 }
  0x3f   :  { %p404_p13 = por %p403_p12, %p402_p11 }
  0x41   :  { %296 = vmatpush3.bf16.msra.mxu1 %v321_v7  ;;  %p405_p0 = pnand %p404_p13, %p398_p10 }
  0x42   :  { %297 = vmatprep.subr.bf16.mxu1 %v430_v0 }
  0x45   :  { %298 = vmatpush3.bf16.msra.mxu1 %v322_v8 }
  0x46   :  { %299 = vmatprep.subr.bf16.mxu1 %v430_v0 }
  0x49   :  { %300 = vmatpush3.bf16.msra.mxu1 %v323_v9 }
  0x4a   :  { %301 = vmatprep.subr.bf16.mxu1 %v430_v0 }
  0x4d   :  { %302 = vmatpush3.bf16.msra.mxu1 %v324_v10 }
  0x4e   :  { %303 = vmatprep.subr.bf16.mxu1 %v430_v0 }
  0x51   :  { %304 = vmatpush3.bf16.msra.mxu1 %v325_v11 }
  0x52   :  { %305 = vmatprep.subr.bf16.mxu1 %v430_v0 }
  0x55   :  { %306 = vmatpush3.bf16.msra.mxu1 %v326_v12 }
 0x10f   :  { %v111_v14 = vpop.f32.mrb[0].mxu0 }
 0x110   :  { %v112_v15 = vadd.f32 %v263_v13, %v111_v14  ;;  %v289_v16 = vpop.f32.mrb[1].mxu0 }
 0x111   :  { %v114_v17 = vpop.f32.mrb[2].mxu0 }
 0x112   :  { %v117_v18 = vmax.f32 %v112_v15, 0.0  ;;  %v290_v19 = vpop.f32.mrb[3].mxu0 }
 0x114   :  { %v118_v20 = vpack.c.bf16 %v117_v18, %v117_v18 }
 0x116   :  { %308 = vmatmul.mubr.bf16.vlgmr.msra.gmra.mrb[0].mxu1 %v118_v20 }
 0x1e9   :  { %v224_v24 = vpop.f32.mrb[0].mxu1 }
 0x1ea   :  { %v225_v25 = vadd.f32 %v265_v23, %v224_v24  ;;  %v309_v26 = vpop.f32.mrb[1].mxu1 }
 0x1eb   :  { %v227_v27 = vpop.f32.mrb[2].mxu1 }
 0x1ec   :  { %v310_v28 = vpop.f32.mrb[3].mxu1  ;;  %v233_v29 = vsel %vm232_vm3, %v225_v25, -inf }
 0x1ed   :  { %234 = vmax.xlane.f32.xlu0 %v233_v29 }
 0x27a   :  { %v235_v30 = vpop.xlane.xlu0 %234 }
 0x27b   :  { %v236_v31 = vsub.f32 %v233_v29, %v235_v30  ;;  %v243_v36 = vsub.f32 %v225_v25, %v235_v30 }
 0x27d   :  { %v237_v32 = vmul.f32 1.442695, %v236_v31 }
 0x27f   :  { %327 = vpow2.f32 %v237_v32 }
 0x289   :  { %v328_v33 = vpop.eup %327 }
 0x28a   :  { %239 = vadd.xlane.f32.xlu0 %v328_v33 }
 0x317   :  { %v240_v34 = vpop.xlane.xlu0 %239 }
 0x318   :  { %329 = vlog2.f32 %v240_v34 }
 0x322   :  { %v330_v35 = vpop.eup %329 }
 0x323   :  { %v242_v37 = vmul.f32 0.6931472, %v330_v35 }
 0x325   :  { %v244_v38 = vsub.f32 %v243_v36, %v242_v37 }
 0x327   :  { %v245_v39 = vsel %vm232_vm3, %v244_v38, %v225_v25 }
 0x328   :  { %246 = vst [vmem:[#allocation8] sm:$0xff] %v245_v39 }
 0x329   :  { %408 = shalt.err (!%p405_p0)
}
 0x32a   :  { %s409_s10 = scalar_lea.hbm %s524_s5, 128 }
 0x32b   :  { %p410_p1 = scmp.ne.s32.totalorder %s524_s5, %s409_s10  ;;  %p413_p2 = scmp.lt.u32.totalorder %s409_s10, %s524_s5 }
 0x32d   :  { %p415_p3 = pnand %p413_p2, %p410_p1 }
 0x32f   :  { %418 = shalt.err (!%p415_p3)
}
 0x330   :  { %256 = dma.vmem_to_hbm [thread:$0]  %s254_s4, 128, %s524_s5, [#allocation4]  }
 0x331   :  { %423 = dma.done.wait [#allocation4], 128  }
 0x332   :  { %424 = vsyncadd [#allocation4], 4294967168 }
 0x333   :  { %260 = vsyncpa [#allocation3], 1 }
 0x334   :  { %261 = vsyncpa [#allocation6], 1 }
 0x335   :  { %262 = vsyncpa [#allocation4], 1 }

</bundles_post_ra>
